<compile_context>
chip_gen: v7x
topology: tpu7x:2x2x1
jax: 0.10.0
libtpu: 0.0.40
codegen_flags: <defaults>
</compile_context>

<pallas_src>
import jax
import jax.numpy as jnp
from jax.experimental import pallas as pl
from jax.experimental.pallas import tpu as pltpu


def _round_up(x, m):
    return ((x + m - 1) // m) * m


def _global_features_kernel(x_ref, w1_ref, b1_ref, w2_ref, b2_ref,
                            w3_ref, b3_ref, o_ref):
    n = pl.program_id(1)

    x = x_ref[...]                                                  # (tile_n, 3) f32

    # --- layer 1 (C_in = 3): VPU broadcast-FMAs (MXU would be >95% idle at K=3)
    w1 = w1_ref[...]                                                # (3, 64) f32
    h = (x[:, 0:1] * w1[0:1, :]
         + x[:, 1:2] * w1[1:2, :]
         + x[:, 2:3] * w1[2:3, :]
         + b1_ref[...])
    h = jnp.maximum(h, 0.0)                                         # (tile_n, 64) f32

    # --- layers 2/3: bf16 MXU matmuls, f32 accumulation, bias + ReLU in f32
    h = jnp.dot(h.astype(jnp.bfloat16), w2_ref[...],
                preferred_element_type=jnp.float32) + b2_ref[...]
    h = jnp.maximum(h, 0.0)                                         # (tile_n, 128)

    h = jnp.dot(h.astype(jnp.bfloat16), w3_ref[...],
                preferred_element_type=jnp.float32) + b3_ref[...]
    h = jnp.maximum(h, 0.0)                                         # (tile_n, 1024)

    partial_max = jnp.max(h, axis=0, keepdims=True)                 # (1, 1024)

    # running max in the resident output block (same block across grid axis 1)
    @pl.when(n == 0)
    def _():
        o_ref[...] = jnp.full(o_ref.shape, -jnp.inf, o_ref.dtype)

    o_ref[...] = jnp.maximum(o_ref[...], partial_max)


def global_features(x_bnc, params, *, tile_n=512, n_split=None):
    """x_bnc: (B, N, 3) float32.  params: folded conv+BN weights.  -> (B, 1024) f32."""
    B, N, C = x_bnc.shape
    assert C == 3
    w1, b1 = params["w1"], params["b1"]      # (3, 64)    f32 , (1, 64)   f32
    w2, b2 = params["w2"], params["b2"]      # (64, 128)  bf16, (1, 128)  f32
    w3, b3 = params["w3"], params["b3"]      # (128,1024) bf16, (1, 1024) f32

    # tile: as large as possible for MXU fill, multiple of 8 (sublane), capped by N
    tile = _round_up(min(tile_n, _round_up(N, 8)), 8)
    n_tiles = pl.cdiv(N, tile)

    # keep >=2 programs on the megacore-parallel axis when B == 1 (v7x has 2 TCs)
    if n_split is None:
        n_split = 2 if (B == 1 and n_tiles >= 2) else 1

    n_chunks = B * n_split
    tiles_per_chunk = pl.cdiv(n_tiles, n_split)
    pts_per_chunk = tiles_per_chunk * tile
    n_pad = pts_per_chunk * n_split
    if n_pad != N:
        # replicate existing points — exact under max-pooling (no masked tail needed)
        idx = jnp.arange(n_pad) % N
        x_bnc = jnp.take(x_bnc, idx, axis=1)
    x_chunks = x_bnc.reshape(n_chunks, pts_per_chunk, 3)

    flops = 2 * n_chunks * pts_per_chunk * (3 * 64 + 64 * 128 + 128 * 1024)
    bytes_accessed = (x_chunks.size * 4 + n_chunks * 1024 * 4
                      + w1.size * 4 + w2.size * 2 + w3.size * 2
                      + (b1.size + b2.size + b3.size) * 4)

    full = lambda arr: pl.BlockSpec(arr.shape, lambda g, n: (0,) * arr.ndim)

    out = pl.pallas_call(
        _global_features_kernel,
        out_shape=jax.ShapeDtypeStruct((n_chunks, 1, 1024), jnp.float32),
        grid_spec=pltpu.PrefetchScalarGridSpec(
            num_scalar_prefetch=0,
            grid=(n_chunks, tiles_per_chunk),
            in_specs=[
                pl.BlockSpec((None, tile, 3), lambda g, n: (g, n, 0)),
                full(w1), full(b1),
                full(w2), full(b2),
                full(w3), full(b3),
            ],
            out_specs=pl.BlockSpec((None, 1, 1024), lambda g, n: (g, 0, 0)),
        ),
        compiler_params=pltpu.CompilerParams(
            dimension_semantics=("parallel", "arbitrary"),
            vmem_limit_bytes=32 * 1024 * 1024),
        cost_estimate=pl.CostEstimate(
            flops=flops, transcendentals=0, bytes_accessed=bytes_accessed),
    )(x_chunks, w1, b1, w2, b2, w3, b3)

    # fold per-chunk partial maxes back to (B, 1024)
    return out.reshape(B, n_split, 1024).max(axis=1)


def _fold_bn(w, b, gamma, beta, mean, var, eps=1e-5):
    """Fold eval-mode BatchNorm1d into a 1x1-conv weight/bias.

    w: (C_out, C_in), b: (C_out,).  Returns W' (C_in, C_out), b' (1, C_out) such that
    y = x @ W' + b' in the (B, N, C) layout.
    """
    scale = gamma / jnp.sqrt(var + eps)
    w_f = w * scale[:, None]
    b_f = (b - mean) * scale + beta
    return w_f.T, b_f[None, :]


def make_params(key):
    """Deterministic synthetic weights matching GlobalFeatures.__init__ shapes."""
    dims = [(64, 3), (128, 64), (1024, 128)]
    params = {}
    for i, (cout, cin) in enumerate(dims, start=1):
        key, kw, kb, kg, kbeta, km, kv = jax.random.split(key, 7)
        w = jax.random.normal(kw, (cout, cin), jnp.float32) * 0.1
        b = jax.random.normal(kb, (cout,), jnp.float32) * 0.1
        gamma = 1.0 + 0.1 * jax.random.normal(kg, (cout,), jnp.float32)
        beta = 0.1 * jax.random.normal(kbeta, (cout,), jnp.float32)
        mean = 0.1 * jax.random.normal(km, (cout,), jnp.float32)
        var = jnp.abs(1.0 + 0.1 * jax.random.normal(kv, (cout,), jnp.float32))
        wf, bf = _fold_bn(w, b, gamma, beta, mean, var)
        if i >= 2:
            wf = wf.astype(jnp.bfloat16)       # bf16-native MXU operands
        params[f"w{i}"] = wf
        params[f"b{i}"] = bf
    return params


def reference(x_bnc, params):
    """Pure-JAX reference with matching numerics (bf16 matmul inputs, f32 accum)."""
    h = jnp.maximum(x_bnc @ params["w1"] + params["b1"], 0.0)
    for i in (2, 3):
        h = jnp.dot(h.astype(jnp.bfloat16), params[f"w{i}"],
                    preferred_element_type=jnp.float32) + params[f"b{i}"]
        h = jnp.maximum(h, 0.0)
    return jnp.max(h, axis=1)                                       # (B, 1024)


if __name__ == "__main__":
    key = jax.random.PRNGKey(0)
    kx, kp, kx2 = jax.random.split(key, 3)

    params = make_params(kp)

    # --- test 1: B=2, N=64, default (large) tile -> grid (2, 1)
    B, N = 2, 64
    x_ncw = jax.random.normal(kx, (B, 3, N), jnp.float32)           # PyTorch (B, 3, N)
    x_bnc = jnp.transpose(x_ncw, (0, 2, 1))                         # kernel (B, N, 3)
    out = jax.block_until_ready(global_features(x_bnc, params))
    ref = reference(x_bnc, params)
    assert out.shape == (B, 1024), out.shape
    assert jnp.allclose(out, ref, atol=1e-2, rtol=1e-2), \
        float(jnp.max(jnp.abs(out - ref)))

    # --- test 2: B=1, N=56, small tile -> multi-tile reduction,
    #             megacore N-split (n_split=2) and replicate-padding of the tail
    B2, N2 = 1, 56
    x2 = jnp.transpose(jax.random.normal(kx2, (B2, 3, N2), jnp.float32), (0, 2, 1))
    out2 = jax.block_until_ready(global_features(x2, params, tile_n=16))
    ref2 = reference(x2, params)
    assert out2.shape == (B2, 1024), out2.shape
    assert jnp.allclose(out2, ref2, atol=1e-2, rtol=1e-2), \
        float(jnp.max(jnp.abs(out2 - ref2)))

    # TODO(synk): PyTorch's trailing .squeeze() turns (1, 1024) into (1024,) for B=1;
    # we keep the (B, 1024) convention.
    print("KERNEL_OK")
</pallas_src>

<mosaic_0001>
module attributes {stable_mosaic.version = 11 : i64} {
  func.func @_global_features_kernel(%arg0: i32, %arg1: i32, %arg2: memref<1x64x3xf32, #tpu.memory_space<vmem>>, %arg3: memref<3x64xf32, #tpu.memory_space<vmem>>, %arg4: memref<1x64xf32, #tpu.memory_space<vmem>>, %arg5: memref<64x128xbf16, #tpu.memory_space<vmem>>, %arg6: memref<1x128xf32, #tpu.memory_space<vmem>>, %arg7: memref<128x1024xbf16, #tpu.memory_space<vmem>>, %arg8: memref<1x1024xf32, #tpu.memory_space<vmem>>, %arg9: memref<1x1x1024xf32, #tpu.memory_space<vmem>>) attributes {dimension_semantics = [#tpu.dimension_semantics<parallel>, #tpu.dimension_semantics<arbitrary>], iteration_bounds = array<i64: 2, 1>, scalar_prefetch = 0 : i64, scratch_operands = 0 : i64, tpu.core_type = #tpu.core_type<tc>, window_params = [{transform_indices = @transform_0, window_bounds = array<i64: 1, 64, 3>}, {pipeline_mode = #tpu.pipeline_mode<synchronous>, transform_indices = @transform_1, window_bounds = array<i64: 3, 64>}, {pipeline_mode = #tpu.pipeline_mode<synchronous>, transform_indices = @transform_2, window_bounds = array<i64: 1, 64>}, {pipeline_mode = #tpu.pipeline_mode<synchronous>, transform_indices = @transform_3, window_bounds = array<i64: 64, 128>}, {pipeline_mode = #tpu.pipeline_mode<synchronous>, transform_indices = @transform_4, window_bounds = array<i64: 1, 128>}, {pipeline_mode = #tpu.pipeline_mode<synchronous>, transform_indices = @transform_5, window_bounds = array<i64: 128, 1024>}, {pipeline_mode = #tpu.pipeline_mode<synchronous>, transform_indices = @transform_6, window_bounds = array<i64: 1, 1024>}, {transform_indices = @transform_7, window_bounds = array<i64: 1, 1, 1024>}]} {
    %c0 = arith.constant 0 : index
    %c0_0 = arith.constant 0 : index
    %c0_1 = arith.constant 0 : index
    %0 = vector.load %arg2[%c0, %c0_0, %c0_1] : memref<1x64x3xf32, #tpu.memory_space<vmem>>, vector<1x64x3xf32>
    %1 = vector.shape_cast %0 : vector<1x64x3xf32> to vector<64x3xf32>
    %c0_2 = arith.constant 0 : index
    %c0_3 = arith.constant 0 : index
    %2 = vector.load %arg3[%c0_2, %c0_3] : memref<3x64xf32, #tpu.memory_space<vmem>>, vector<3x64xf32>
    %3 = vector.extract_strided_slice %1 {offsets = [0, 0], sizes = [64, 1], strides = [1, 1]} : vector<64x3xf32> to vector<64x1xf32>
    %4 = vector.extract_strided_slice %2 {offsets = [0, 0], sizes = [1, 64], strides = [1, 1]} : vector<3x64xf32> to vector<1x64xf32>
    %5 = vector.broadcast %3 : vector<64x1xf32> to vector<64x64xf32>
    %6 = vector.broadcast %4 : vector<1x64xf32> to vector<64x64xf32>
    %7 = arith.mulf %5, %6 : vector<64x64xf32>
    %8 = vector.extract_strided_slice %1 {offsets = [0, 1], sizes = [64, 1], strides = [1, 1]} : vector<64x3xf32> to vector<64x1xf32>
    %9 = vector.extract_strided_slice %2 {offsets = [1, 0], sizes = [1, 64], strides = [1, 1]} : vector<3x64xf32> to vector<1x64xf32>
    %10 = vector.broadcast %8 : vector<64x1xf32> to vector<64x64xf32>
    %11 = vector.broadcast %9 : vector<1x64xf32> to vector<64x64xf32>
    %12 = arith.mulf %10, %11 : vector<64x64xf32>
    %13 = arith.addf %7, %12 : vector<64x64xf32>
    %14 = vector.extract_strided_slice %1 {offsets = [0, 2], sizes = [64, 1], strides = [1, 1]} : vector<64x3xf32> to vector<64x1xf32>
    %15 = vector.extract_strided_slice %2 {offsets = [2, 0], sizes = [1, 64], strides = [1, 1]} : vector<3x64xf32> to vector<1x64xf32>
    %16 = vector.broadcast %14 : vector<64x1xf32> to vector<64x64xf32>
    %17 = vector.broadcast %15 : vector<1x64xf32> to vector<64x64xf32>
    %18 = arith.mulf %16, %17 : vector<64x64xf32>
    %19 = arith.addf %13, %18 : vector<64x64xf32>
    %c0_4 = arith.constant 0 : index
    %c0_5 = arith.constant 0 : index
    %20 = vector.load %arg4[%c0_4, %c0_5] : memref<1x64xf32, #tpu.memory_space<vmem>>, vector<1x64xf32>
    %21 = vector.broadcast %20 : vector<1x64xf32> to vector<64x64xf32>
    %22 = arith.addf %19, %21 : vector<64x64xf32>
    %cst = arith.constant 0.000000e+00 : f32
    %23 = vector.broadcast %cst : f32 to vector<64x64xf32>
    %24 = arith.maximumf %22, %23 : vector<64x64xf32>
    %25 = arith.truncf %24 : vector<64x64xf32> to vector<64x64xbf16>
    %c0_6 = arith.constant 0 : index
    %c0_7 = arith.constant 0 : index
    %26 = vector.load %arg5[%c0_6, %c0_7] : memref<64x128xbf16, #tpu.memory_space<vmem>>, vector<64x128xbf16>
    %cst_8 = arith.constant dense<0.000000e+00> : vector<64x128xf32>
    %27 = tpu.matmul %25, %26, %cst_8 {dimension_numbers = #tpu.dot_dimension_numbers<[1], [0], [0], [1], [0, 0, 1, 1], [], []>} : vector<64x64xbf16>, vector<64x128xbf16>, vector<64x128xf32> -> vector<64x128xf32>
    %c0_9 = arith.constant 0 : index
    %c0_10 = arith.constant 0 : index
    %28 = vector.load %arg6[%c0_9, %c0_10] : memref<1x128xf32, #tpu.memory_space<vmem>>, vector<1x128xf32>
    %29 = vector.broadcast %28 : vector<1x128xf32> to vector<64x128xf32>
    %30 = arith.addf %27, %29 : vector<64x128xf32>
    %cst_11 = arith.constant 0.000000e+00 : f32
    %31 = vector.broadcast %cst_11 : f32 to vector<64x128xf32>
    %32 = arith.maximumf %30, %31 : vector<64x128xf32>
    %33 = arith.truncf %32 : vector<64x128xf32> to vector<64x128xbf16>
    %c0_12 = arith.constant 0 : index
    %c0_13 = arith.constant 0 : index
    %34 = vector.load %arg7[%c0_12, %c0_13] : memref<128x1024xbf16, #tpu.memory_space<vmem>>, vector<128x1024xbf16>
    %cst_14 = arith.constant dense<0.000000e+00> : vector<64x1024xf32>
    %35 = tpu.matmul %33, %34, %cst_14 {dimension_numbers = #tpu.dot_dimension_numbers<[1], [0], [0], [1], [0, 0, 1, 1], [], []>} : vector<64x128xbf16>, vector<128x1024xbf16>, vector<64x1024xf32> -> vector<64x1024xf32>
    %c0_15 = arith.constant 0 : index
    %c0_16 = arith.constant 0 : index
    %36 = vector.load %arg8[%c0_15, %c0_16] : memref<1x1024xf32, #tpu.memory_space<vmem>>, vector<1x1024xf32>
    %37 = vector.broadcast %36 : vector<1x1024xf32> to vector<64x1024xf32>
    %38 = arith.addf %35, %37 : vector<64x1024xf32>
    %cst_17 = arith.constant 0.000000e+00 : f32
    %39 = vector.broadcast %cst_17 : f32 to vector<64x1024xf32>
    %40 = arith.maximumf %38, %39 : vector<64x1024xf32>
    %cst_18 = arith.constant dense<0xFF800000> : vector<1024xf32>
    %41 = vector.multi_reduction <maximumf>, %40, %cst_18 [0] : vector<64x1024xf32> to vector<1024xf32>
    %42 = vector.shape_cast %41 : vector<1024xf32> to vector<1x1024xf32>
    %c0_i32 = arith.constant 0 : i32
    %43 = arith.cmpi eq, %arg1, %c0_i32 : i32
    %44 = arith.extui %43 : i1 to i32
    %c0_i32_19 = arith.constant 0 : i32
    %45 = arith.cmpi ne, %44, %c0_i32_19 : i32
    scf.if %45 {
      %cst_26 = arith.constant 0xFF800000 : f32
      %52 = vector.broadcast %cst_26 : f32 to vector<1x1024xf32>
      %c0_27 = arith.constant 0 : index
      %c0_28 = arith.constant 0 : index
      %c0_29 = arith.constant 0 : index
      %53 = vector.load %arg9[%c0_27, %c0_28, %c0_29] : memref<1x1x1024xf32, #tpu.memory_space<vmem>>, vector<1x1x1024xf32>
      %54 = vector.shape_cast %53 : vector<1x1x1024xf32> to vector<1x1024xf32>
      %55 = vector.shape_cast %52 : vector<1x1024xf32> to vector<1x1x1024xf32>
      tpu.vector_store %arg9[%c0_27, %c0_28, %c0_29], %55 {strides = array<i32>} : memref<1x1x1024xf32, #tpu.memory_space<vmem>>, vector<1x1x1024xf32>,
    } else {
    }
    %c0_20 = arith.constant 0 : index
    %c0_21 = arith.constant 0 : index
    %c0_22 = arith.constant 0 : index
    %46 = vector.load %arg9[%c0_20, %c0_21, %c0_22] : memref<1x1x1024xf32, #tpu.memory_space<vmem>>, vector<1x1x1024xf32>
    %47 = vector.shape_cast %46 : vector<1x1x1024xf32> to vector<1x1024xf32>
    %48 = arith.maximumf %47, %42 : vector<1x1024xf32>
    %c0_23 = arith.constant 0 : index
    %c0_24 = arith.constant 0 : index
    %c0_25 = arith.constant 0 : index
    %49 = vector.load %arg9[%c0_23, %c0_24, %c0_25] : memref<1x1x1024xf32, #tpu.memory_space<vmem>>, vector<1x1x1024xf32>
    %50 = vector.shape_cast %49 : vector<1x1x1024xf32> to vector<1x1024xf32>
    %51 = vector.shape_cast %48 : vector<1x1024xf32> to vector<1x1x1024xf32>
    tpu.vector_store %arg9[%c0_23, %c0_24, %c0_25], %51 {strides = array<i32>} : memref<1x1x1024xf32, #tpu.memory_space<vmem>>, vector<1x1x1024xf32>,
    return
  }
  func.func @transform_0(%arg0: i32, %arg1: i32) -> (i32, i32, i32) {
    %c0_i32 = arith.constant 0 : i32
    %c0_i32_0 = arith.constant 0 : i32
    return %arg0, %arg1, %c0_i32 : i32, i32, i32
  }
  func.func @transform_1(%arg0: i32, %arg1: i32) -> (i32, i32) {
    %c0_i32 = arith.constant 0 : i32
    %c0_i32_0 = arith.constant 0 : i32
    %c0_i32_1 = arith.constant 0 : i32
    return %c0_i32, %c0_i32_0 : i32, i32
  }
  func.func @transform_2(%arg0: i32, %arg1: i32) -> (i32, i32) {
    %c0_i32 = arith.constant 0 : i32
    %c0_i32_0 = arith.constant 0 : i32
    %c0_i32_1 = arith.constant 0 : i32
    return %c0_i32, %c0_i32_0 : i32, i32
  }
  func.func @transform_3(%arg0: i32, %arg1: i32) -> (i32, i32) {
    %c0_i32 = arith.constant 0 : i32
    %c0_i32_0 = arith.constant 0 : i32
    %c0_i32_1 = arith.constant 0 : i32
    return %c0_i32, %c0_i32_0 : i32, i32
  }
  func.func @transform_4(%arg0: i32, %arg1: i32) -> (i32, i32) {
    %c0_i32 = arith.constant 0 : i32
    %c0_i32_0 = arith.constant 0 : i32
    %c0_i32_1 = arith.constant 0 : i32
    return %c0_i32, %c0_i32_0 : i32, i32
  }
  func.func @transform_5(%arg0: i32, %arg1: i32) -> (i32, i32) {
    %c0_i32 = arith.constant 0 : i32
    %c0_i32_0 = arith.constant 0 : i32
    %c0_i32_1 = arith.constant 0 : i32
    return %c0_i32, %c0_i32_0 : i32, i32
  }
  func.func @transform_6(%arg0: i32, %arg1: i32) -> (i32, i32) {
    %c0_i32 = arith.constant 0 : i32
    %c0_i32_0 = arith.constant 0 : i32
    %c0_i32_1 = arith.constant 0 : i32
    return %c0_i32, %c0_i32_0 : i32, i32
  }
  func.func @transform_7(%arg0: i32, %arg1: i32) -> (i32, i32, i32) {
    %c0_i32 = arith.constant 0 : i32
    %c0_i32_0 = arith.constant 0 : i32
    %c0_i32_1 = arith.constant 0 : i32
    return %arg0, %c0_i32, %c0_i32_0 : i32, i32, i32
  }
}

</mosaic_0001>

<bundles_post_ra>
// kernel: tpu_custom_call.1
= control target key start
LH: loop header
LB: loop body
LE: loop exit
PB: predicated region body
PF: predicated region fallthrough
CT: control target
= control target key end

     0   :  { %12 = vsyncpa [#allocation3], 0  ;;  %s2540_s0 = inlined_call_operand.vmem [shape: f32[2,64,3], index: 0, kind: input, shape index: {}]   ;;  %s2541_s1 = inlined_call_operand.vmem [shape: f32[3,64], index: 1, kind: input, shape index: {}]   ;;  %s2542_s2 = inlined_call_operand.vmem [shape: f32[1,64], index: 2, kind: input, shape index: {}]   ;;  %s2543_s3 = inlined_call_operand.vmem [shape: bf16[64,128], index: 3, kind: input, shape index: {}]   ;;  %s2544_s4 = inlined_call_operand.vmem [shape: f32[1,128], index: 4, kind: input, shape index: {}]   ;;  %s2545_s5 = inlined_call_operand.hbm [shape: bf16[128,1024], index: 5, kind: input, shape index: {}]   ;;  %s2546_s6 = inlined_call_operand.vmem [shape: f32[1,1024], index: 6, kind: input, shape index: {}]   ;;  %s2547_s7 = inlined_call_operand.hbm [shape: f32[2,1,1024], index: 7, kind: output, shape index: {}]  }
   0x1   :  { %13 = vsyncpa [#allocation4], 0 }
   0x2   :  { %15 = vsyncpa [#allocation4 + $0x1], 0  ;;  %s2076_s24 = smov 0   ;;  %s2078_s25 = smov 0  }
   0x3   :  { %s2080_s26 = smov 0   ;;  %s2082_s27 = smov 0  }
   0x4   :  { %s2084_s28 = smov 0   ;;  %s2086_s29 = smov 0  }
   0x5 LB: > { %s1694_s30 = sadd.s32 4294967295, %s2026_s29   ;;  %s1695_s8 = sadd.s32 4294967294, %s2026_s29   ;;  %s2026_s29 = sphi %s2086_s29, %s21_s29   ;;  %s2022_s28 = sphi %s2084_s28, %s2565_s28   ;;  %s2018_s27 = sphi %s2082_s27, %s2564_s27   ;;  %s2014_s26 = sphi %s2080_s26, %s2563_s26   ;;  %s2010_s25 = sphi %s2078_s25, %s2562_s25   ;;  %s2006_s24 = sphi %s2076_s24, %s2561_s24  }
   0x6   : > { %s33_s9 = sadd.s32 1, %s2022_s28  ;;  %s194_s10 = sadd.s32 1, %s2014_s26 }
   0x7   : > { %p35_p0 = scmp.ge.s32.totalorder %s33_s9, 2  ;;  %p204_p1 = scmp.ne.s32.totalorder %s2014_s26, %s2010_s25 }
   0x8   : > { %p205_p2 = scmp.eq.s32.totalorder %s1694_s30, 1  ;;  %p210_p3 = scmp.ne.s32.totalorder %s2010_s25, %s2006_s24 }
   0x9   : > { %s2567_s9 = smov (%p35_p0, %s33_s9), 0  ;;  %p211_p5 = scmp.eq.s32.totalorder %s1695_s8, 1 }
   0xa   : > { %p2116_p4 = por %p205_p2, %p204_p1  ;;  %s191_s12 = ssub.s32 %s2022_s28, %s2567_s9 }
   0xb   : > { %p1696_p6 = scmp.ge.s32.totalorder %s2026_s29, 1  ;;  %p192_p7 = scmp.eq.s32.totalorder %s191_s12, 0 }
   0xc   : > { %s2552_s11 = scalar_select %p2116_p4, 1, 0 }
   0xd   : > { %p2123_p8 = por %p211_p5, %p210_p3  ;;  %p218_p9 = scmp.lt.s32.totalorder %s2026_s29, 3 }
   0xe   : > { %s2129_s14 = scalar_select %p192_p7, %s2014_s26, %s194_s10  }
   0xf   : > { %s2553_s13 = scalar_select %p2123_p8, 1, 0 }
  0x10   : > { %p2131_p10 = pnand %p1696_p6, %p218_p9  ;;  %p2135_p11 = scmp.eq.s32.totalorder %s1694_s30, 0 }
  0x11   : > { %s2028_s17 = smov [#allocation2]   ;;  %s1916_s22 = scalar_lea.hbm %s2545_s5, 8192 }
  0x12   : > { %s2554_s15 = scalar_select %p2131_p10, 1, 0 }
  0x13   : > { %s2555_s16 = scalar_select %p2135_p11, 1, 0 }
  0x14   : > { %p1831_p12 = pneg %p2131_p10  ;;  %s242_s18 = sshll.u32 %s2028_s17, 4  ;;  %s243_s18 = int_to_ptr.vmem [resolvable:$true] %s242_s18 }
  0x15   : > { %p1917_p0 = scmp.ne.s32.totalorder %s2545_s5, %s1916_s22  ;;  %p1923_p5 = scmp.lt.u32.totalorder %s1916_s22, %s2545_s5 }
  0x16   : > { %p2143_p13 = pnand %p2135_p11, %p1831_p12 }
  0x18   : > { %p1918_p1 = pneg %p2143_p13 }
  0x1a   : > { %p1919_p2 = pnand %p1918_p1, %p1917_p0 }
  0x1c   : > { %p1920_p3 = pneg %p1919_p2 }
  0x1e   : > { %p1925_p6 = pnand %p1923_p5, %p1920_p3 }
  0x20   : > { %1928 = shalt.err (!%p1925_p6)
}
  0x21   : > { %s1929_s12 = scalar_lea.vmem %s243_s18, 8192  ;;  %p1937_p8 = scmp.lt.s32.totalorder %s243_s18, %s243_s18 }
  0x22   : > { %p1930_p7 = scmp.ne.s32.totalorder %s243_s18, %s1929_s12  ;;  %p1938_p4 = scmp.lt.s32.totalorder %s1929_s12, %s1929_s12 }
  0x24   : > { %p1932_p9 = pnand %p1930_p7, %p1918_p1  ;;  %p1939_p11 = por %p1938_p4, %p1937_p8 }
  0x26   : > { %p1933_p12 = pneg %p1932_p9 }
  0x28   : > { %p1940_p10 = pnand %p1939_p11, %p1933_p12 }
  0x2a   : > { %1943 = shalt.err (!%p1940_p10)
}
  0x2b   : > { %s2029_s17 = smov 512   ;;  %s2030_s20 = smov 32  }
  0x2c   : > { %1834 = dma.hbm_to_vmem [thread:$0]  (!%p2143_p13), %s2545_s5, 8192, %s243_s18, [#allocation3], %s2029_s17, %s2029_s17, %s2030_s20  }
  0x2d   : > { %p2557_p0 = scmp.ne.s32.totalorder %s2554_s15, 0 }
  0x2e   : > { %p2558_p2 = scmp.ne.s32.totalorder (!%p2557_p0), %s2555_s16, 0 }
  0x2f   : > { %274 = sbr.rel (%p2557_p0) target bundleno = 786 (0x312), region = 48 }
  0x36   : > { %1997 = dma.done.wait (%p2558_p2), [#allocation3], 8192  }
  0x37   : > { %1999 = vsyncadd (%p2558_p2), [#allocation3], 4294959104  ;;  %p311_p4 = scmp.lt.s32.totalorder %s2018_s27, 1  ;;  %v2031_v0 = vmov 1   ;;  %v2032_v1 = vmov 0   ;;  %v2033_v4 = vmov 2   ;;  %v370_v43 = vlaneseq }
  0x38   : > { %1899 = vset.pattern.permute.xlu1 %v2031_v0  ;;  %1898 = vset.pattern.permute.xlu0 %v2032_v1  ;;  %v1912_v8 = vld [vmem:[%s2543_s3] sm:$0xff]   ;;  %v1913_v9 = vld [vmem:[%s2543_s3 + $0x8] sm:$0xff]   ;;  %v1914_v11 = vld [vmem:[%s2543_s3 + $0x10] sm:$0xff]   ;;  %vm552_vm0 = vcmask 523264   ;;  %s307_s12 = sand.u32 1, %s2010_s25   ;;  %s1784_s20 = sshll.u32 %s2018_s27, 7 }
  0x39   : > { %s312_s19 = scalar_select %p311_p4, %s2018_s27, 1  ;;  %1100 = vmatprep.mubr.bf16.mxu1 %v2032_v1  ;;  %1793 = vmatprep.subr.bf16.mxu0 %v1912_v8  ;;  %v1915_v13 = vld [vmem:[%s2543_s3 + $0x18] sm:$0xff]   ;;  %v642_v15 = vld [vmem:[#allocation2] sm:$0xff]  ;;  %v2202_v17 = vld [vmem:[#allocation2 + $0x8] sm:$0xff]  ;;  %v2210_v45 = vshrl.u32 %v370_v43, 7 }
  0x3a   : > { %1794 = vmatpush3.bf16.msra.mxu0 %v1912_v8  ;;  %v646_v16 = vld [vmem:[#allocation2 + $0x20] sm:$0xff]  ;;  %v2204_v19 = vld [vmem:[#allocation2 + $0x28] sm:$0xff]  ;;  %s1701_s17 = sshll.u32 %s307_s12, 3  ;;  %s2493_s15 = scalar_lea.hbm %s2547_s7, %s1784_s20 }
  0x3b   : > { %s1783_s18 = sshll.u32 %s312_s19, 6  ;;  %1795 = vmatprep.subr.bf16.mxu0 %v1913_v9  ;;  %v1715_v18 = vcombine.high %v642_v15, %v646_v16  ;;  %v1714_v20 = vcombine.low %v642_v15, %v646_v16  ;;  %v650_v21 = vld [vmem:[#allocation2 + $0x40] sm:$0xff]  ;;  %v1716_v23 = vcombine.low %v2202_v17, %v2204_v19  ;;  %v1717_v24 = vcombine.high %v2202_v17, %v2204_v19  ;;  %v663_v43 = vld [vmem:[#allocation2 + $0xa8] sm:$0xff]  ;;  %s309_s21 = scalar_lea.vmem [#allocation5], %s1701_s17 }
  0x3c   : > { %s2176_s30 = scalar_lea.vmem %s2540_s0, %s1783_s18  ;;  %v654_v22 = vld [vmem:[#allocation2 + $0x60] sm:$0xff]  ;;  %v372_v48 = vsub.s32 0, %v2210_v45  ;;  %v416_v51 = vsub.s32 1, %v2210_v45  ;;  %v468_v52 = vsub.s32 2, %v2210_v45  ;;  %s1609_s23 = sshll.u32 %s309_s21, 4  ;;  %s2495_s23 = int_to_ptr.vmem [resolvable:$true] %s1609_s23 }
  0x3d   : > { %v321_v2 = vld [vmem:[%s2176_s30] sm:$0xff]  ;;  %v322_v3 = vld [vmem:[%s2176_s30 + $0x8] sm:$0xff]  ;;  %v324_v5 = vld [vmem:[%s2176_s30 + $0x18] sm:$0xff]  ;;  %v1723_v25 = vcombine.high %v650_v21, %v654_v22  ;;  %1068 = vmatprep.subr.bf16.mxu1 %v1715_v18  ;;  %v1722_v28 = vcombine.low %v650_v21, %v654_v22  ;;  %s1595_s22 = scalar_lea.sflag [#allocation4], %s307_s12  ;;  %p2559_p10 = scmp.ne.s32.totalorder %s2552_s11, 0 }
  0x3e   : > { %383 = vperm.xlu1 %1899, %v321_v2   ;;  %332 = vperm.xlu0 %1898, %v321_v2   ;;  %v323_v6 = vld [vmem:[%s2176_s30 + $0x10] sm:$0xff]  ;;  %v325_v7 = vld [vmem:[%s2176_s30 + $0x20] sm:$0xff]  ;;  %v326_v10 = vld [vmem:[%s2176_s30 + $0x28] sm:$0xff]  ;;  %s2035_s27 = smov [#allocation5]  }
  0x3f   : > { %1796 = vmatpush3.bf16.msra.mxu0 %v1913_v9  ;;  %v327_v12 = vld [vmem:[%s2176_s30 + $0x30] sm:$0xff]  ;;  %v328_v14 = vld [vmem:[%s2176_s30 + $0x38] sm:$0xff]  ;;  %v658_v26 = vld [vmem:[#allocation2 + $0x80] sm:$0xff]  ;;  %1069 = vmatpush1.bf16.msra.mxu1 %v1714_v20  ;;  %s1944_s30 = scalar_lea.vmem %s2495_s23, 128  ;;  %s1948_s16 = sshll.u32 %s2035_s27, 4  ;;  %s1949_s16 = int_to_ptr.vmem [resolvable:$false] %s1948_s16 }
  0x40   : > { %1797 = vmatprep.subr.bf16.mxu0 %v1914_v11  ;;  %v662_v27 = vld [vmem:[#allocation2 + $0xa0] sm:$0xff]  ;;  %1070 = vmatprep.subr.bf16.mxu1 %v1723_v25  ;;  %p1945_p8 = scmp.ne.s32.totalorder %s2495_s23, %s1944_s30  ;;  %s1950_s8 = scalar_lea.vmem %s1949_s16, 256 }
  0x41   : > { %v1731_v29 = vcombine.high %v658_v26, %v662_v27  ;;  %v666_v30 = vld [vmem:[#allocation2 + $0xc0] sm:$0xff]  ;;  %v1730_v32 = vcombine.low %v658_v26, %v662_v27  ;;  %p1951_p1 = scmp.lt.s32.totalorder %s2495_s23, %s1949_s16  ;;  %p1952_p3 = scmp.lt.s32.totalorder %s1950_s8, %s1944_s30 }
  0x42   : > { %387 = vperm.xlu1 %1899, %v322_v3   ;;  %1903 = vset.pattern.permute.xlu0 %v2033_v4  ;;  %v670_v31 = vld [vmem:[#allocation2 + $0xe0] sm:$0xff]  ;;  %p1946_p11 = pnand %p1945_p8, %p2559_p10 }
  0x43   : > { %439 = vperm.xlu0 %1903, %v322_v3   ;;  %1798 = vmatpush3.bf16.msra.mxu0 %v1914_v11  ;;  %v1739_v33 = vcombine.high %v666_v30, %v670_v31  ;;  %v674_v34 = vld [vmem:[#allocation2 + $0x100] sm:$0xff]  ;;  %v1738_v36 = vcombine.low %v666_v30, %v670_v31  ;;  %p1953_p5 = por %p1952_p3, %p1951_p1 }
  0x44   : > { %1799 = vmatprep.subr.bf16.mxu0 %v1915_v13  ;;  %1071 = vmatpush1.bf16.msra.mxu1 %v1722_v28  ;;  %v678_v35 = vld [vmem:[#allocation2 + $0x120] sm:$0xff]  ;;  %p1947_p13 = pneg %p1946_p11 }
  0x45   : > { %1072 = vmatprep.subr.bf16.mxu1 %v1731_v29  ;;  %v1747_v37 = vcombine.high %v674_v34, %v678_v35  ;;  %v682_v38 = vld [vmem:[#allocation2 + $0x140] sm:$0xff]  ;;  %v1746_v40 = vcombine.low %v674_v34, %v678_v35  ;;  %v651_v34 = vld [vmem:[#allocation2 + $0x48] sm:$0xff] }
  0x46   : > { %1900 = vset.pattern.permute.xlu1 %v2032_v1  ;;  %v686_v39 = vld [vmem:[#allocation2 + $0x160] sm:$0xff]  ;;  %v655_v35 = vld [vmem:[#allocation2 + $0x68] sm:$0xff]  ;;  %p1954_p6 = pnand %p1953_p5, %p1947_p13 }
  0x47   : > { %347 = vperm.xlu1 %1900, %v324_v5   ;;  %1904 = vset.pattern.permute.xlu0 %v2032_v1  ;;  %v1755_v41 = vcombine.high %v682_v38, %v686_v39  ;;  %v1754_v42 = vcombine.low %v682_v38, %v686_v39  ;;  %v329_v50 = vld [vmem:[%s2541_s1] sm:$0x7] }
  0x48   : > { %337 = vperm.xlu0 %1904, %v322_v3   ;;  %1800 = vmatpush3.bf16.msra.mxu0 %v1915_v13  ;;  %v2220_v53 = vrot.slane %v329_v50, %v372_v48  ;;  %v2224_v55 = vrot.slane %v329_v50, %v416_v51  ;;  %v2228_v56 = vrot.slane %v329_v50, %v468_v52 }
  0x49   : > { %1141 = vmatprep.subr.bf16.mxu0 %v1717_v24  ;;  %1073 = vmatpush1.bf16.msra.mxu1 %v1730_v32 }
  0x4a   : > { %1074 = vmatprep.subr.bf16.mxu1 %v1739_v33 }
  0x4b   : > { %1901 = vset.pattern.permute.xlu1 %v2031_v0 }
  0x4c   : > { %395 = vperm.xlu1 %1901, %v324_v5   ;;  %342 = vperm.xlu0 %1904, %v323_v6  }
  0x4d   : > { %1075 = vmatpush1.bf16.msra.mxu1 %v1738_v36 }
  0x4e   : > { %1076 = vmatprep.subr.bf16.mxu1 %v1747_v37 }
  0x50   : > { %1902 = vset.pattern.permute.xlu1 %v2033_v4  ;;  %352 = vperm.xlu0 %1904, %v325_v7  }
  0x51   : > { %435 = vperm.xlu1 %1902, %v321_v2   ;;  %1077 = vmatpush1.bf16.msra.mxu1 %v1746_v40  ;;  %v1725_v40 = vcombine.high %v651_v34, %v655_v35 }
  0x52   : > { %1078 = vmatprep.subr.bf16.mxu1 %v1755_v41 }
  0x54   : > { %1905 = vset.pattern.permute.xlu0 %v2031_v0 }
  0x55   : > { %443 = vperm.xlu1 %1902, %v323_v6   ;;  %391 = vperm.xlu0 %1905, %v323_v6   ;;  %v2238_v6 = vld [vmem:[%s2542_s2] ss:$0 sm:$0xff] }
  0x56   : > { %1079 = vmatpush1.bf16.msra.mxu1 %v1754_v42  ;;  %v659_v42 = vld [vmem:[#allocation2 + $0x88] sm:$0xff] }
  0x59   : > { %447 = vperm.xlu1 %1902, %v324_v5   ;;  %403 = vperm.xlu0 %1905, %v326_v10  }
  0x5d   : > { %1906 = vset.pattern.permute.xlu1 %v2032_v1  ;;  %407 = vperm.xlu0 %1905, %v327_v12  }
  0x5e   : > { %357 = vperm.xlu1 %1906, %v326_v10  }
  0x61   : > { %1910 = vset.pattern.permute.xlu0 %v2033_v4 }
  0x62   : > { %1907 = vset.pattern.permute.xlu1 %v2031_v0  ;;  %451 = vperm.xlu0 %1910, %v325_v7  }
  0x63   : > { %399 = vperm.xlu1 %1907, %v325_v7  }
  0x66   : > { %463 = vperm.xlu0 %1910, %v328_v14  }
  0x67   : > { %1908 = vset.pattern.permute.xlu1 %v2032_v1 }
  0x68   : > { %362 = vperm.xlu1 %1908, %v327_v12  }
  0x6c   : > { %367 = vperm.xlu1 %1908, %v328_v14  }
  0x70   : > { %1909 = vset.pattern.permute.xlu1 %v2031_v0 }
  0x71   : > { %411 = vperm.xlu1 %1909, %v328_v14  }
  0x75   : > { %1911 = vset.pattern.permute.xlu1 %v2033_v4 }
  0x76   : > { %455 = vperm.xlu1 %1911, %v326_v10  }
  0x7a   : > { %459 = vperm.xlu1 %1911, %v327_v12  }
  0xbd   : > { %v384_v44 = vpop.permute.xlu1 %383  ;;  %v333_v46 = vpop.permute.xlu0 %332 }
  0xbe   : > { %v418_v0 = vmul.f32 %v2224_v55, %v384_v44  ;;  %v374_v2 = vmul.f32 %v2220_v53, %v333_v46  ;;  %v1724_v44 = vcombine.low %v651_v34, %v655_v35  ;;  %v1733_v46 = vcombine.high %v659_v42, %v663_v43 }
  0xc0   : > { %v426_v7 = vadd.f32 %v418_v0, %v374_v2  ;;  %v683_v0 = vld [vmem:[#allocation2 + $0x148] sm:$0xff] }
  0xc1   : > { %v388_v47 = vpop.permute.xlu1 %387  ;;  %v687_v2 = vld [vmem:[#allocation2 + $0x168] sm:$0xff] }
  0xc2   : > { %v440_v49 = vpop.permute.xlu0 %439  ;;  %v419_v59 = vmul.f32 %v2224_v55, %v388_v47  ;;  %v667_v47 = vld [vmem:[#allocation2 + $0xc8] sm:$0xff] }
  0xc3   : > { %v471_v60 = vmul.f32 %v2228_v56, %v440_v49  ;;  %v671_v49 = vld [vmem:[#allocation2 + $0xe8] sm:$0xff] }
  0xc6   : > { %v348_v54 = vpop.permute.xlu1 %347 }
  0xc7   : > { %v338_v57 = vpop.permute.xlu0 %337  ;;  %v377_v18 = vmul.f32 %v2220_v53, %v348_v54 }
  0xc8   : > { %v375_v58 = vmul.f32 %v2220_v53, %v338_v57  ;;  %v1732_v57 = vcombine.low %v659_v42, %v663_v43  ;;  %v695_v43 = vld [vmem:[#allocation2 + $0x1a8] sm:$0xff] }
  0xca   : > { %v427_v61 = vadd.f32 %v419_v59, %v375_v58  ;;  %v1741_v58 = vcombine.high %v667_v47, %v671_v49  ;;  %v675_v59 = vld [vmem:[#allocation2 + $0x108] sm:$0xff] }
  0xcb   : > { %v396_v62 = vpop.permute.xlu1 %395  ;;  %v343_v63 = vpop.permute.xlu0 %342 }
  0xcc   : > { %v479_v3 = vadd.f32 %v471_v60, %v427_v61  ;;  %v376_v9 = vmul.f32 %v2220_v53, %v343_v63  ;;  %v421_v14 = vmul.f32 %v2224_v55, %v396_v62  ;;  %v679_v60 = vld [vmem:[#allocation2 + $0x128] sm:$0xff]  ;;  %v1740_v63 = vcombine.low %v667_v47, %v671_v49  ;;  %v702_v49 = vld [vmem:[#allocation2 + $0x1e0] sm:$0xff] }
  0xcd   : > { %v1749_v19 = vcombine.high %v675_v59, %v679_v60 }
  0xce   : > { %v494_v11 = vadd.f32 %v2238_v6, %v479_v3  ;;  %v429_v26 = vadd.f32 %v421_v14, %v377_v18  ;;  %v1756_v18 = vcombine.low %v683_v0, %v687_v2 }
  0xcf   : > { %v353_v4 = vpop.permute.xlu0 %352 }
  0xd0   : > { %v436_v5 = vpop.permute.xlu1 %435  ;;  %v502_v24 = vmax.f32 %v494_v11, 0.0  ;;  %v1757_v11 = vcombine.high %v683_v0, %v687_v2 }
  0xd1   : > { %v470_v8 = vmul.f32 %v2228_v56, %v436_v5 }
  0xd3   : > { %v478_v10 = vadd.f32 %v470_v8, %v426_v7  ;;  %v1748_v8 = vcombine.low %v675_v59, %v679_v60 }
  0xd4   : > { %v444_v12 = vpop.permute.xlu1 %443  ;;  %v392_v13 = vpop.permute.xlu0 %391 }
  0xd5   : > { %v420_v15 = vmul.f32 %v2224_v55, %v392_v13  ;;  %v493_v16 = vadd.f32 %v2238_v6, %v478_v10  ;;  %v472_v20 = vmul.f32 %v2228_v56, %v444_v12 }
  0xd7   : > { %v428_v21 = vadd.f32 %v420_v15, %v376_v9  ;;  %v501_v22 = vmax.f32 %v493_v16, 0.0 }
  0xd8   : > { %v448_v25 = vpop.permute.xlu1 %447  ;;  %v404_v39 = vpop.permute.xlu0 %403 }
  0xd9   : > { %v480_v27 = vadd.f32 %v472_v20, %v428_v21  ;;  %v473_v28 = vmul.f32 %v2228_v56, %v448_v25  ;;  %v509_v29 = vpack.c.bf16 %v502_v24, %v501_v22  ;;  %v423_v12 = vmul.f32 %v2224_v55, %v404_v39 }
  0xdb   : > { %v495_v30 = vadd.f32 %v2238_v6, %v480_v27  ;;  %v481_v31 = vadd.f32 %v473_v28, %v429_v26  ;;  %1801 = vmatprep.mubr.msk.bf16.mxu0 %vm552_vm0, %v509_v29 }
  0xdc   : > { %v408_v50 = vpop.permute.xlu0 %407 }
  0xdd   : > { %v496_v32 = vadd.f32 %v2238_v6, %v481_v31  ;;  %v358_v33 = vpop.permute.xlu1 %357  ;;  %v503_v36 = vmax.f32 %v495_v30, 0.0  ;;  %v424_v22 = vmul.f32 %v2224_v55, %v408_v50  ;;  %v699_v50 = vld [vmem:[#allocation2 + $0x1c8] sm:$0xff] }
  0xde   : > { %v379_v13 = vmul.f32 %v2220_v53, %v358_v33 }
  0xdf   : > { %v504_v37 = vmax.f32 %v496_v32, 0.0 }
  0xe0   : > { %v431_v21 = vadd.f32 %v423_v12, %v379_v13 }
  0xe1   : > { %v510_v38 = vpack.c.bf16 %v504_v37, %v503_v36  ;;  %v452_v17 = vpop.permute.xlu0 %451 }
  0xe2   : > { %v400_v41 = vpop.permute.xlu1 %399  ;;  %v474_v5 = vmul.f32 %v2228_v56, %v452_v17 }
  0xe3   : > { %1802 = vmatmul.mubr.msk.bf16.vlgmr.msra.gmra.mrb[0].mxu0 %vm552_vm0, %v510_v38  ;;  %v422_v62 = vmul.f32 %v2224_v55, %v400_v41  ;;  %v694_v41 = vld [vmem:[#allocation2 + $0x1a0] sm:$0xff] }
  0xe4   : > { %1142 = vmatpush1.bf16.msra.mxu0 %v1716_v23  ;;  %v378_v23 = vmul.f32 %v2220_v53, %v353_v4 }
  0xe5   : > { %1143 = vmatprep.subr.bf16.mxu0 %v1725_v40  ;;  %v464_v10 = vpop.permute.xlu0 %463  ;;  %v690_v40 = vld [vmem:[#allocation2 + $0x180] sm:$0xff] }
  0xe6   : > { %v430_v3 = vadd.f32 %v422_v62, %v378_v23  ;;  %v477_v16 = vmul.f32 %v2228_v56, %v464_v10  ;;  %v1763_v42 = vcombine.high %v690_v40, %v694_v41  ;;  %v1762_v47 = vcombine.low %v690_v40, %v694_v41  ;;  %v648_v62 = vld [vmem:[#allocation2 + $0x30] sm:$0xff]  ;;  %v649_v23 = vld [vmem:[#allocation2 + $0x38] sm:$0xff] }
  0xe7   : > { %v363_v54 = vpop.permute.xlu1 %362 }
  0xe8   : > { %1144 = vmatpush1.bf16.msra.mxu0 %v1724_v44  ;;  %v482_v4 = vadd.f32 %v474_v5, %v430_v3  ;;  %v380_v24 = vmul.f32 %v2220_v53, %v363_v54  ;;  %1080 = vmatprep.subr.bf16.mxu1 %v1763_v42  ;;  %v2283_v3 = vld [vmem:[%s2544_s4] ss:$0 sm:$0xff]  ;;  %v680_v42 = vld [vmem:[#allocation2 + $0x130] sm:$0xff] }
  0xe9   : > { %1145 = vmatprep.subr.bf16.mxu0 %v1733_v46  ;;  %1081 = vmatpush1.bf16.msra.mxu1 %v1762_v47 }
  0xea   : > { %v497_v26 = vadd.f32 %v2238_v6, %v482_v4  ;;  %v432_v30 = vadd.f32 %v424_v22, %v380_v24  ;;  %v657_v22 = vld [vmem:[#allocation2 + $0x78] sm:$0xff] }
  0xeb   : > { %v368_v61 = vpop.permute.xlu1 %367 }
  0xec   : > { %1146 = vmatpush1.bf16.msra.mxu0 %v1732_v57  ;;  %v381_v14 = vmul.f32 %v2220_v53, %v368_v61  ;;  %v505_v33 = vmax.f32 %v497_v26, 0.0  ;;  %v703_v57 = vld [vmem:[#allocation2 + $0x1e8] sm:$0xff]  ;;  %v644_v61 = vld [vmem:[#allocation2 + $0x10] sm:$0xff] }
  0xed   : > { %1147 = vmatprep.subr.bf16.mxu0 %v1741_v58  ;;  %v1772_v58 = vcombine.low %v699_v50, %v703_v57  ;;  %v1773_v59 = vcombine.high %v699_v50, %v703_v57  ;;  %v1718_v17 = vcombine.low %v644_v61, %v648_v62  ;;  %v684_v50 = vld [vmem:[#allocation2 + $0x150] sm:$0xff]  ;;  %v685_v57 = vld [vmem:[#allocation2 + $0x158] sm:$0xff] }
  0xf0   : > { %v412_v7 = vpop.permute.xlu1 %411  ;;  %1148 = vmatpush1.bf16.msra.mxu0 %v1740_v63  ;;  %v645_v63 = vld [vmem:[#allocation2 + $0x18] sm:$0xff] }
  0xf1   : > { %v425_v9 = vmul.f32 %v2224_v55, %v412_v7  ;;  %1149 = vmatprep.subr.bf16.mxu0 %v1749_v19  ;;  %v1719_v19 = vcombine.high %v644_v61, %v648_v62  ;;  %v2275_v0 = vcombine.low %v645_v63, %v649_v23  ;;  %v2277_v2 = vcombine.high %v645_v63, %v649_v23  ;;  %v692_v63 = vld [vmem:[#allocation2 + $0x190] sm:$0xff]  ;;  %v697_v23 = vld [vmem:[#allocation2 + $0x1b8] sm:$0xff] }
  0xf3   : > { %v433_v15 = vadd.f32 %v425_v9, %v381_v14 }
  0xf4   : > { %1150 = vmatpush1.bf16.msra.mxu0 %v1748_v8 }
  0xf5   : > { %v456_v20 = vpop.permute.xlu1 %455  ;;  %1151 = vmatprep.subr.bf16.mxu0 %v1757_v11  ;;  %v485_v27 = vadd.f32 %v477_v16, %v433_v15  ;;  %v652_v15 = vld [vmem:[#allocation2 + $0x50] sm:$0xff] }
  0xf6   : > { %v475_v25 = vmul.f32 %v2228_v56, %v456_v20  ;;  %v656_v20 = vld [vmem:[#allocation2 + $0x70] sm:$0xff] }
  0xf7   : > { %v500_v34 = vadd.f32 %v2238_v6, %v485_v27  ;;  %v1727_v26 = vcombine.high %v652_v15, %v656_v20 }
  0xf8   : > { %v483_v28 = vadd.f32 %v475_v25, %v431_v21  ;;  %1152 = vmatpush1.bf16.msra.mxu0 %v1756_v18  ;;  %v653_v21 = vld [vmem:[#allocation2 + $0x58] sm:$0xff] }
  0xf9   : > { %v460_v29 = vpop.permute.xlu1 %459  ;;  %v508_v37 = vmax.f32 %v500_v34, 0.0  ;;  %v2293_v27 = vcombine.high %v653_v21, %v657_v22 }
  0xfa   : > { %v498_v31 = vadd.f32 %v2238_v6, %v483_v28  ;;  %v476_v32 = vmul.f32 %v2228_v56, %v460_v29  ;;  %v691_v56 = vld [vmem:[#allocation2 + $0x188] sm:$0xff]  ;;  %v660_v28 = vld [vmem:[#allocation2 + $0x90] sm:$0xff] }
  0xfb   : > { %v1764_v44 = vcombine.low %v691_v56, %v695_v43  ;;  %v1765_v46 = vcombine.high %v691_v56, %v695_v43  ;;  %v664_v29 = vld [vmem:[#allocation2 + $0xb0] sm:$0xff]  ;;  %v677_v43 = vld [vmem:[#allocation2 + $0x118] sm:$0xff] }
  0xfc   : > { %v506_v35 = vmax.f32 %v498_v31, 0.0  ;;  %v484_v55 = vadd.f32 %v476_v32, %v432_v30  ;;  %v661_v30 = vld [vmem:[#allocation2 + $0x98] sm:$0xff]  ;;  %v1726_v32 = vcombine.low %v652_v15, %v656_v20  ;;  %v1735_v34 = vcombine.high %v660_v28, %v664_v29  ;;  %v676_v56 = vld [vmem:[#allocation2 + $0x110] sm:$0xff] }
  0xfd   : > { %1153 = vmatprep.subr.bf16.mxu0 %v1765_v46  ;;  %v665_v31 = vld [vmem:[#allocation2 + $0xb8] sm:$0xff] }
  0xfe   : > { %v511_v36 = vpack.c.bf16 %v506_v35, %v505_v33  ;;  %v499_v53 = vadd.f32 %v2238_v6, %v484_v55  ;;  %v698_v6 = vld [vmem:[#allocation2 + $0x1c0] sm:$0xff]  ;;  %1154 = vmatpush1.bf16.msra.mxu0 %v1764_v44  ;;  %v2300_v33 = vcombine.low %v653_v21, %v657_v22  ;;  %v2303_v35 = vcombine.high %v661_v30, %v665_v31  ;;  %v668_v55 = vld [vmem:[#allocation2 + $0xd0] sm:$0xff]  ;;  %v681_v44 = vld [vmem:[#allocation2 + $0x138] sm:$0xff] }
  0xff   : > { %v1771_v54 = vcombine.high %v698_v6, %v702_v49  ;;  %v1770_v60 = vcombine.low %v698_v6, %v702_v49  ;;  %1155 = vmatprep.subr.bf16.mxu0 %v1773_v59  ;;  %v1751_v6 = vcombine.high %v676_v56, %v680_v42  ;;  %v2319_v49 = vcombine.high %v677_v43, %v681_v44 }
 0x100   : > { %v507_v38 = vmax.f32 %v499_v53, 0.0  ;;  %1805 = vmatprep.mubr.msk.bf16.mxu0 %vm552_vm0, %v511_v36  ;;  %v672_v36 = vld [vmem:[#allocation2 + $0xf0] sm:$0xff]  ;;  %v669_v53 = vld [vmem:[#allocation2 + $0xd8] sm:$0xff]  ;;  %v1750_v59 = vcombine.low %v676_v56, %v680_v42 }
 0x101   : > { %1082 = vmatprep.subr.bf16.mxu1 %v1771_v54  ;;  %v1743_v40 = vcombine.high %v668_v55, %v672_v36  ;;  %v1742_v46 = vcombine.low %v668_v55, %v672_v36  ;;  %v688_v54 = vld [vmem:[#allocation2 + $0x170] sm:$0xff] }
 0x102   : > { %v512_v39 = vpack.c.bf16 %v508_v37, %v507_v38  ;;  %1083 = vmatpush1.bf16.msra.mxu1 %v1770_v60  ;;  %1156 = vmatpush1.bf16.msra.mxu0 %v1772_v58  ;;  %v673_v37 = vld [vmem:[#allocation2 + $0xf8] sm:$0xff]  ;;  %v1734_v38 = vcombine.low %v660_v28, %v664_v29  ;;  %v2322_v60 = vcombine.low %v677_v43, %v681_v44 }
 0x103   : > { %1214 = vmatprep.subr.bf16.mxu1 %v1719_v19  ;;  %1287 = vmatprep.subr.bf16.mxu0 %v2277_v2  ;;  %v2309_v41 = vcombine.high %v669_v53, %v673_v37  ;;  %v2316_v47 = vcombine.low %v669_v53, %v673_v37  ;;  %v689_v58 = vld [vmem:[#allocation2 + $0x178] sm:$0xff]  ;;  %v1759_v61 = vcombine.high %v684_v50, %v688_v54 }
 0x104   : > { %1806 = vmatmul.mubr.msk.bf16.gmra.mrb[4].mxu0 %vm552_vm0, %v512_v39  ;;  %v2306_v39 = vcombine.low %v661_v30, %v665_v31  ;;  %v2325_v62 = vcombine.high %v685_v57, %v689_v58  ;;  %v693_v19 = vld [vmem:[#allocation2 + $0x198] sm:$0xff] }
 0x105   : > { %1173 = vmatprep.mubr.bf16.mxu0 %v2032_v1 }
 0x1b6   : > { %v1803_v5 = vpop.f32.mrb[0].mxu0 }
 0x1b7   : > { %v608_v7 = vadd.f32 %v1803_v5, %v2283_v3  ;;  %v599_v8 = vpop.f32.mrb[1].mxu0  ;;  %v1758_v5 = vcombine.low %v684_v50, %v688_v54 }
 0x1b8   : > { %v600_v9 = vadd.f32 %v2283_v3, %v599_v8  ;;  %v1804_v10 = vpop.f32.mrb[2].mxu0 }
 0x1b9   : > { %v611_v11 = vadd.f32 %v1804_v10, %v2283_v3  ;;  %v602_v12 = vpop.f32.mrb[3].mxu0  ;;  %v632_v14 = vmax.f32 %v608_v7, 0.0  ;;  %v2328_v7 = vcombine.low %v685_v57, %v689_v58  ;;  %v700_v10 = vld [vmem:[#allocation2 + $0x1d0] sm:$0xff] }
 0x1ba   : > { %v603_v13 = vadd.f32 %v2283_v3, %v602_v12  ;;  %v630_v16 = vmax.f32 %v600_v9, 0.0  ;;  %v2331_v9 = vcombine.high %v693_v19, %v697_v23  ;;  %v701_v12 = vld [vmem:[#allocation2 + $0x1d8] sm:$0xff] }
 0x1bb   : > { %v633_v4 = vmax.f32 %v611_v11, 0.0  ;;  %v704_v11 = vld [vmem:[#allocation2 + $0x1f0] sm:$0xff] }
 0x1bc   : > { %v631_v18 = vmax.f32 %v603_v13, 0.0  ;;  %v705_v13 = vld [vmem:[#allocation2 + $0x1f8] sm:$0xff]  ;;  %v1774_v30 = vcombine.low %v700_v10, %v704_v11 }
 0x1bd   : > { %v2289_v24 = vpack.c.bf16 %v633_v4, %v632_v14  ;;  %v1768_v4 = vcombine.low %v693_v19, %v697_v23  ;;  %v1776_v31 = vcombine.low %v701_v12, %v705_v13 }
 0x1be   : > { %v2291_v25 = vpack.c.bf16 %v631_v18, %v630_v16  ;;  %v1775_v16 = vcombine.high %v700_v10, %v704_v11  ;;  %v1777_v18 = vcombine.high %v701_v12, %v705_v13 }
 0x1c0   : > { %1101 = vmatmul.mubr.bf16.vlgmr.msra.gmra.mrb[0].mxu1 %v2291_v25  ;;  %1174 = vmatmul.mubr.bf16.vlgmr.msra.gmra.mrb[8].mxu0 %v2291_v25 }
 0x1c1   : > { %1110 = vmatprep.mubr.bf16.mxu1 %v2032_v1  ;;  %1183 = vmatprep.mubr.bf16.mxu0 %v2032_v1 }
 0x1c2   : > { %1215 = vmatpush1.bf16.msra.mxu1 %v1718_v17  ;;  %1288 = vmatpush1.bf16.msra.mxu0 %v2275_v0  ;;  %v696_v17 = vld [vmem:[#allocation2 + $0x1b0] sm:$0xff] }
 0x1c3   : > { %1216 = vmatprep.subr.bf16.mxu1 %v1727_v26  ;;  %1289 = vmatprep.subr.bf16.mxu0 %v2293_v27  ;;  %v1767_v8 = vcombine.high %v692_v63, %v696_v17  ;;  %v1766_v14 = vcombine.low %v692_v63, %v696_v17 }
 0x1c6   : > { %1217 = vmatpush1.bf16.msra.mxu1 %v1726_v32  ;;  %1290 = vmatpush1.bf16.msra.mxu0 %v2300_v33 }
 0x1c7   : > { %1218 = vmatprep.subr.bf16.mxu1 %v1735_v34  ;;  %1291 = vmatprep.subr.bf16.mxu0 %v2303_v35 }
 0x1c8   : > { %1111 = vmatmul.mubr.bf16.gmra.mrb[4].mxu1 %v2289_v24  ;;  %1184 = vmatmul.mubr.bf16.gmra.mrb[12].mxu0 %v2289_v24 }
 0x1c9   : > { %1120 = vmatprep.mubr.bf16.mxu1 %v2032_v1  ;;  %1193 = vmatprep.mubr.bf16.mxu0 %v2032_v1 }
 0x1ca   : > { %1219 = vmatpush1.bf16.msra.mxu1 %v1734_v38  ;;  %1292 = vmatpush1.bf16.msra.mxu0 %v2306_v39 }
 0x1cb   : > { %1220 = vmatprep.subr.bf16.mxu1 %v1743_v40  ;;  %1293 = vmatprep.subr.bf16.mxu0 %v2309_v41 }
 0x1ce   : > { %1221 = vmatpush1.bf16.msra.mxu1 %v1742_v46  ;;  %1294 = vmatpush1.bf16.msra.mxu0 %v2316_v47 }
 0x1cf   : > { %1222 = vmatprep.subr.bf16.mxu1 %v1751_v6  ;;  %1295 = vmatprep.subr.bf16.mxu0 %v2319_v49 }
 0x1d2   : > { %1223 = vmatpush1.bf16.msra.mxu1 %v1750_v59  ;;  %1296 = vmatpush1.bf16.msra.mxu0 %v2322_v60 }
 0x1d3   : > { %1224 = vmatprep.subr.bf16.mxu1 %v1759_v61  ;;  %1297 = vmatprep.subr.bf16.mxu0 %v2325_v62 }
 0x1d6   : > { %1225 = vmatpush1.bf16.msra.mxu1 %v1758_v5  ;;  %1298 = vmatpush1.bf16.msra.mxu0 %v2328_v7 }
 0x1d7   : > { %v1807_v15 = vpop.f32.mrb[4].mxu0  ;;  %1226 = vmatprep.subr.bf16.mxu1 %v1767_v8  ;;  %1299 = vmatprep.subr.bf16.mxu0 %v2331_v9 }
 0x1d8   : > { %v624_v20 = vadd.f32 %v1807_v15, %v2283_v3  ;;  %v615_v21 = vpop.f32.mrb[5].mxu0 }
 0x1d9   : > { %v616_v22 = vadd.f32 %v2283_v3, %v615_v21  ;;  %v1808_v26 = vpop.f32.mrb[6].mxu0 }
 0x1da   : > { %v627_v28 = vadd.f32 %v1808_v26, %v2283_v3  ;;  %v618_v29 = vpop.f32.mrb[7].mxu0  ;;  %1227 = vmatpush1.bf16.msra.mxu1 %v1766_v14  ;;  %1300 = vmatpush1.bf16.msra.mxu0 %v1768_v4  ;;  %v636_v34 = vmax.f32 %v624_v20, 0.0 }
 0x1db   : > { %v619_v32 = vadd.f32 %v2283_v3, %v618_v29  ;;  %1228 = vmatprep.subr.bf16.mxu1 %v1775_v16  ;;  %1301 = vmatprep.subr.bf16.mxu0 %v1777_v18  ;;  %v634_v36 = vmax.f32 %v616_v22, 0.0 }
 0x1dc   : > { %v637_v55 = vmax.f32 %v627_v28, 0.0 }
 0x1dd   : > { %v635_v53 = vmax.f32 %v619_v32, 0.0 }
 0x1de   : > { %v641_v37 = vpack.c.bf16 %v637_v55, %v636_v34  ;;  %1229 = vmatpush1.bf16.msra.mxu1 %v1774_v30  ;;  %1302 = vmatpush1.bf16.msra.mxu0 %v1776_v31 }
 0x1df   : > { %v640_v38 = vpack.c.bf16 %v635_v53, %v634_v36  ;;  %1809 = vmatprep.subr.bf16.mxu1 %v2277_v2  ;;  %v722_v2 = vsub.s32 3, %v2210_v45 }
 0x1e1   : > { %1121 = vmatmul.mubr.bf16.gmra.mrb[8].mxu1 %v640_v38  ;;  %1194 = vmatmul.mubr.bf16.gmra.mrb[16].mxu0 %v640_v38 }
 0x1e2   : > { %1130 = vmatprep.mubr.bf16.mxu1 %v2032_v1  ;;  %1203 = vmatprep.mubr.bf16.mxu0 %v2032_v1 }
 0x1e9   : > { %1131 = vmatmul.mubr.bf16.gmra.mrb[12].mxu1 %v641_v37  ;;  %1204 = vmatmul.mubr.bf16.gmra.mrb[20].mxu0 %v641_v37 }
 0x1ea   : > { %1246 = vmatprep.mubr.bf16.mxu1 %v2032_v1  ;;  %1319 = vmatprep.mubr.bf16.mxu0 %v2032_v1 }
 0x1f1   : > { %1247 = vmatmul.mubr.bf16.vlgmr.msra.gmra.mrb[16].mxu1 %v2291_v25  ;;  %1320 = vmatmul.mubr.bf16.vlgmr.msra.gmra.mrb[24].mxu0 %v2291_v25 }
 0x1f2   : > { %1817 = vmatpush1.bf16.msra.mxu1 %v2275_v0  ;;  %1256 = vmatprep.mubr.bf16.mxu1 %v2032_v1  ;;  %v2369_v0 = vld [vmem:[%s2546_s6] sm:$0xff] }
 0x1f3   : > { %1810 = vmatprep.subr.bf16.mxu1 %v2293_v27  ;;  %1329 = vmatprep.mubr.bf16.mxu0 %v2032_v1  ;;  %v2375_v3 = vrot.slane %v2369_v0, %v372_v48  ;;  %v2388_v25 = vrot.slane %v2369_v0, %v722_v2 }
 0x1f6   : > { %1818 = vmatpush1.bf16.msra.mxu1 %v2300_v33 }
 0x1f7   : > { %1811 = vmatprep.subr.bf16.mxu1 %v2303_v35 }
 0x1f9   : > { %1257 = vmatmul.mubr.bf16.gmra.mrb[20].mxu1 %v2289_v24  ;;  %1330 = vmatmul.mubr.bf16.gmra.mrb[28].mxu0 %v2289_v24  ;;  %v2380_v24 = vrot.slane %v2369_v0, %v468_v52 }
 0x1fa   : > { %1819 = vmatpush1.bf16.msra.mxu1 %v2306_v39  ;;  %1266 = vmatprep.mubr.bf16.mxu1 %v2032_v1 }
 0x1fb   : > { %1812 = vmatprep.subr.bf16.mxu1 %v2309_v41  ;;  %1339 = vmatprep.mubr.bf16.mxu0 %v2032_v1 }
 0x1fe   : > { %1820 = vmatpush1.bf16.msra.mxu1 %v2316_v47 }
 0x1ff   : > { %1813 = vmatprep.subr.bf16.mxu1 %v2319_v49 }
 0x201   : > { %1267 = vmatmul.mubr.bf16.gmra.mrb[24].mxu1 %v640_v38  ;;  %1340 = vmatmul.mubr.bf16.gmra.mrb[32].mxu0 %v640_v38 }
 0x202   : > { %1821 = vmatpush1.bf16.msra.mxu1 %v2322_v60  ;;  %1276 = vmatprep.mubr.bf16.mxu1 %v2032_v1 }
 0x203   : > { %1814 = vmatprep.subr.bf16.mxu1 %v2325_v62 }
 0x206   : > { %1822 = vmatpush1.bf16.msra.mxu1 %v2328_v7 }
 0x207   : > { %1815 = vmatprep.subr.bf16.mxu1 %v2331_v9 }
 0x209   : > { %1277 = vmatmul.mubr.bf16.gmra.mrb[28].mxu1 %v641_v37 }
 0x20a   : > { %1823 = vmatpush1.bf16.msra.mxu1 %v1768_v4  ;;  %1349 = vmatprep.mubr.bf16.mxu1 %v2032_v1  ;;  %v2385_v1 = vrot.slane %v2369_v0, %v416_v51 }
 0x20b   : > { %1816 = vmatprep.subr.bf16.mxu1 %v1777_v18 }
 0x20e   : > { %1824 = vmatpush1.bf16.msra.mxu1 %v1776_v31 }
 0x211   : > { %1350 = vmatmul.mubr.bf16.vlgmr.msra.gmra.mrb[32].mxu1 %v641_v37 }
 0x293   : > { %v1102_v27 = vpop.f32.mrb[0].mxu1  ;;  %v1175_v33 = vpop.f32.mrb[8].mxu0 }
 0x294   : > { %v1103_v35 = vadd.f32 %v1102_v27, %v2375_v3  ;;  %v1176_v48 = vadd.f32 %v1175_v33, %v2380_v24  ;;  %v1104_v39 = vpop.f32.mrb[1].mxu1  ;;  %v1177_v40 = vpop.f32.mrb[9].mxu0 }
 0x295   : > { %v1105_v41 = vadd.f32 %v1104_v39, %v2385_v1  ;;  %v1178_v52 = vadd.f32 %v1177_v40, %v2388_v25  ;;  %v1106_v56 = vpop.f32.mrb[2].mxu1  ;;  %v1179_v42 = vpop.f32.mrb[10].mxu0  ;;  %v726_v39 = vsub.s32 4, %v2210_v45 }
 0x296   : > { %v1107_v51 = vadd.f32 %v1106_v56, %v2375_v3  ;;  %v1180_v43 = vadd.f32 %v1179_v42, %v2380_v24  ;;  %v1108_v44 = vpop.f32.mrb[3].mxu1  ;;  %v1181_v46 = vpop.f32.mrb[11].mxu0  ;;  %v1360_v49 = vmax.f32 %v1103_v35, 0.0  ;;  %v1362_v50 = vmax.f32 %v1176_v48, 0.0 }
 0x297   : > { %v1109_v47 = vadd.f32 %v1108_v44, %v2385_v1  ;;  %v1182_v6 = vadd.f32 %v1181_v46, %v2388_v25  ;;  %v1361_v58 = vmax.f32 %v1105_v41, 0.0  ;;  %v1363_v59 = vmax.f32 %v1178_v52, 0.0 }
 0x298   : > { %v1368_v54 = vmax.f32 %v1107_v51, 0.0  ;;  %v1370_v57 = vmax.f32 %v1180_v43, 0.0  ;;  %v734_v42 = vsub.s32 6, %v2210_v45  ;;  %v730_v51 = vsub.s32 5, %v2210_v45 }
 0x299   : > { %v1369_v60 = vmax.f32 %v1109_v47, 0.0  ;;  %v1371_v61 = vmax.f32 %v1182_v6, 0.0  ;;  %v2034_v6 = vmov 1966171168  }
 0x29a   : > { %v1424_v62 = vmax.f32 %v1360_v49, %v1368_v54  ;;  %v1450_v63 = vmax.f32 %v1362_v50, %v1370_v57  ;;  %v1547_v49 = vunpack.c.l.s4 %v2034_v6  ;;  %v738_v50 = vsub.s32 7, %v2210_v45 }
 0x29b   : > { %v1437_v17 = vmax.f32 %v1361_v58, %v1369_v60  ;;  %v1463_v19 = vmax.f32 %v1363_v59, %v1371_v61  ;;  %v1112_v23 = vpop.f32.mrb[4].mxu1  ;;  %v1185_v5 = vpop.f32.mrb[12].mxu0 }
 0x29c   : > { %v1113_v7 = vadd.f32 %v1112_v23, %v2375_v3  ;;  %v1186_v8 = vadd.f32 %v1185_v5, %v2380_v24  ;;  %v1114_v9 = vpop.f32.mrb[5].mxu1  ;;  %v1187_v10 = vpop.f32.mrb[13].mxu0 }
 0x29d   : > { %v1115_v11 = vadd.f32 %v1114_v9, %v2385_v1  ;;  %v1188_v12 = vadd.f32 %v1187_v10, %v2388_v25  ;;  %v1116_v13 = vpop.f32.mrb[6].mxu1  ;;  %v1189_v14 = vpop.f32.mrb[14].mxu0 }
 0x29e   : > { %v1376_v4 = vmax.f32 %v1113_v7, 0.0  ;;  %v1378_v15 = vmax.f32 %v1186_v8, 0.0  ;;  %v1117_v16 = vadd.f32 %v1116_v13, %v2375_v3  ;;  %v1190_v18 = vadd.f32 %v1189_v14, %v2380_v24  ;;  %v1118_v20 = vpop.f32.mrb[7].mxu1  ;;  %v1191_v21 = vpop.f32.mrb[15].mxu0 }
 0x29f   : > { %v1377_v22 = vmax.f32 %v1115_v11, 0.0  ;;  %v1379_v26 = vmax.f32 %v1188_v12, 0.0  ;;  %v1119_v28 = vadd.f32 %v1118_v20, %v2385_v1  ;;  %v1192_v29 = vadd.f32 %v1191_v21, %v2388_v25 }
 0x2a0   : > { %v1425_v30 = vmax.f32 %v1424_v62, %v1376_v4  ;;  %v1451_v31 = vmax.f32 %v1450_v63, %v1378_v15  ;;  %v1384_v32 = vmax.f32 %v1117_v16, 0.0  ;;  %v1386_v34 = vmax.f32 %v1190_v18, 0.0 }
 0x2a1   : > { %v1438_v55 = vmax.f32 %v1437_v17, %v1377_v22  ;;  %v1464_v36 = vmax.f32 %v1463_v19, %v1379_v26  ;;  %v1385_v53 = vmax.f32 %v1119_v28, 0.0  ;;  %v1387_v37 = vmax.f32 %v1192_v29, 0.0 }
 0x2a2   : > { %v1426_v38 = vmax.f32 %v1425_v30, %v1384_v32  ;;  %v1452_v2 = vmax.f32 %v1451_v31, %v1386_v34  ;;  %v2419_v20 = vrot.slane %v2369_v0, %v726_v39  ;;  %v2424_v29 = vrot.slane %v2369_v0, %v734_v42 }
 0x2a3   : > { %v1439_v27 = vmax.f32 %v1438_v55, %v1385_v53  ;;  %v1465_v33 = vmax.f32 %v1464_v36, %v1387_v37  ;;  %v2427_v30 = vrot.slane %v2369_v0, %v730_v51  ;;  %v1548_v36 = vunpack.c.0.s8 %v1547_v49 }
 0x2a4   : > { %v2432_v53 = vrot.slane %v2369_v0, %v738_v50 }
 0x2b4   : > { %v1122_v35 = vpop.f32.mrb[8].mxu1  ;;  %v1195_v48 = vpop.f32.mrb[16].mxu0 }
 0x2b5   : > { %v1123_v40 = vadd.f32 %v1122_v35, %v2375_v3  ;;  %v1196_v41 = vadd.f32 %v1195_v48, %v2380_v24  ;;  %v1124_v52 = vpop.f32.mrb[9].mxu1  ;;  %v1197_v56 = vpop.f32.mrb[17].mxu0 }
 0x2b6   : > { %v1125_v43 = vadd.f32 %v1124_v52, %v2385_v1  ;;  %v1198_v44 = vadd.f32 %v1197_v56, %v2388_v25  ;;  %v1126_v46 = vpop.f32.mrb[10].mxu1  ;;  %v1199_v47 = vpop.f32.mrb[18].mxu0 }
 0x2b7   : > { %v1392_v54 = vmax.f32 %v1123_v40, 0.0  ;;  %v1394_v57 = vmax.f32 %v1196_v41, 0.0  ;;  %v1127_v58 = vadd.f32 %v1126_v46, %v2375_v3  ;;  %v1200_v59 = vadd.f32 %v1199_v47, %v2380_v24  ;;  %v1128_v60 = vpop.f32.mrb[11].mxu1  ;;  %v1201_v61 = vpop.f32.mrb[19].mxu0 }
 0x2b8   : > { %v1393_v62 = vmax.f32 %v1125_v43, 0.0  ;;  %v1395_v63 = vmax.f32 %v1198_v44, 0.0  ;;  %v1129_v17 = vadd.f32 %v1128_v60, %v2385_v1  ;;  %v1202_v19 = vadd.f32 %v1201_v61, %v2388_v25 }
 0x2b9   : > { %v1427_v23 = vmax.f32 %v1426_v38, %v1392_v54  ;;  %v1453_v5 = vmax.f32 %v1452_v2, %v1394_v57  ;;  %v1400_v7 = vmax.f32 %v1127_v58, 0.0  ;;  %v1402_v8 = vmax.f32 %v1200_v59, 0.0 }
 0x2ba   : > { %v1440_v9 = vmax.f32 %v1439_v27, %v1393_v62  ;;  %v1466_v10 = vmax.f32 %v1465_v33, %v1395_v63  ;;  %v1401_v11 = vmax.f32 %v1129_v17, 0.0  ;;  %v1403_v12 = vmax.f32 %v1202_v19, 0.0 }
 0x2bb   : > { %v1428_v13 = vmax.f32 %v1427_v23, %v1400_v7  ;;  %v1454_v14 = vmax.f32 %v1453_v5, %v1402_v8 }
 0x2bc   : > { %v1441_v4 = vmax.f32 %v1440_v9, %v1401_v11  ;;  %v1467_v15 = vmax.f32 %v1466_v10, %v1403_v12  ;;  %v1132_v16 = vpop.f32.mrb[12].mxu1  ;;  %v1205_v18 = vpop.f32.mrb[20].mxu0 }
 0x2bd   : > { %v1133_v21 = vadd.f32 %v1132_v16, %v2375_v3  ;;  %v1206_v22 = vadd.f32 %v1205_v18, %v2380_v24  ;;  %v1134_v26 = vpop.f32.mrb[13].mxu1  ;;  %v1207_v28 = vpop.f32.mrb[21].mxu0 }
 0x2be   : > { %v1135_v31 = vadd.f32 %v1134_v26, %v2385_v1  ;;  %v1208_v32 = vadd.f32 %v1207_v28, %v2388_v25  ;;  %v1136_v34 = vpop.f32.mrb[14].mxu1  ;;  %v1209_v55 = vpop.f32.mrb[22].mxu0 }
 0x2bf   : > { %v1408_v37 = vmax.f32 %v1133_v21, 0.0  ;;  %v1410_v38 = vmax.f32 %v1206_v22, 0.0  ;;  %v1137_v2 = vadd.f32 %v1136_v34, %v2375_v3  ;;  %v1210_v27 = vadd.f32 %v1209_v55, %v2380_v24  ;;  %v1138_v33 = vpop.f32.mrb[15].mxu1  ;;  %v1211_v35 = vpop.f32.mrb[23].mxu0 }
 0x2c0   : > { %v1409_v48 = vmax.f32 %v1135_v31, 0.0  ;;  %v1411_v39 = vmax.f32 %v1208_v32, 0.0  ;;  %v1139_v40 = vadd.f32 %v1138_v33, %v2385_v1  ;;  %v1212_v41 = vadd.f32 %v1211_v35, %v2388_v25 }
 0x2c1   : > { %v1429_v52 = vmax.f32 %v1428_v13, %v1408_v37  ;;  %v1455_v56 = vmax.f32 %v1454_v14, %v1410_v38  ;;  %v1416_v42 = vmax.f32 %v1137_v2, 0.0  ;;  %v1418_v51 = vmax.f32 %v1210_v27, 0.0 }
 0x2c2   : > { %v1442_v0 = vmax.f32 %v1441_v4, %v1409_v48  ;;  %v1468_v43 = vmax.f32 %v1467_v15, %v1411_v39  ;;  %v1417_v44 = vmax.f32 %v1139_v40, 0.0  ;;  %v1419_v46 = vmax.f32 %v1212_v41, 0.0 }
 0x2c3   : > { %v1430_v47 = vmax.f32 %v1429_v52, %v1416_v42  ;;  %v1456_v3 = vmax.f32 %v1455_v56, %v1418_v51  ;;  %v2439_v24 = vsub.s32 %v1548_v36, %v2210_v45 }
 0x2c4   : > { %v1443_v6 = vmax.f32 %v1442_v0, %v1417_v44  ;;  %v1469_v49 = vmax.f32 %v1468_v43, %v1419_v46  ;;  %v1248_v50 = vpop.f32.mrb[16].mxu1  ;;  %v1321_v54 = vpop.f32.mrb[24].mxu0 }
 0x2c5   : > { %v1431_v1 = vrot.slane %v1430_v47, 4  ;;  %v1457_v57 = vrot.slane %v1456_v3, 4  ;;  %v1249_v25 = vadd.f32 %v1248_v50, %v2419_v20  ;;  %v1322_v58 = vadd.f32 %v1321_v54, %v2424_v29  ;;  %v1250_v59 = vpop.f32.mrb[17].mxu1  ;;  %v1323_v60 = vpop.f32.mrb[25].mxu0 }
 0x2c6   : > { %v1444_v61 = vrot.slane %v1443_v6, 4  ;;  %v1470_v62 = vrot.slane %v1469_v49, 4  ;;  %v1251_v63 = vadd.f32 %v1250_v59, %v2427_v30  ;;  %v1324_v17 = vadd.f32 %v1323_v60, %v2432_v53  ;;  %v1252_v19 = vpop.f32.mrb[18].mxu1  ;;  %v1325_v45 = vpop.f32.mrb[26].mxu0 }
 0x2c7   : > { %v1432_v23 = vmax.f32 %v1430_v47, %v1431_v1  ;;  %v1458_v5 = vmax.f32 %v1456_v3, %v1457_v57  ;;  %v1364_v7 = vmax.f32 %v1249_v25, 0.0  ;;  %v1366_v8 = vmax.f32 %v1322_v58, 0.0  ;;  %v1254_v9 = vpop.f32.mrb[19].mxu1  ;;  %v1327_v10 = vpop.f32.mrb[27].mxu0 }
 0x2c8   : > { %v1445_v11 = vmax.f32 %v1443_v6, %v1444_v61  ;;  %v1471_v12 = vmax.f32 %v1469_v49, %v1470_v62  ;;  %v1365_v13 = vmax.f32 %v1251_v63, 0.0  ;;  %v1367_v14 = vmax.f32 %v1324_v17, 0.0 }
 0x2c9   : > { %v1433_v4 = vrot.slane %v1432_v23, 2  ;;  %v1459_v15 = vrot.slane %v1458_v5, 2  ;;  %v1253_v16 = vadd.f32 %v1252_v19, %v2419_v20  ;;  %v1326_v18 = vadd.f32 %v1325_v45, %v2424_v29 }
 0x2ca   : > { %v1446_v21 = vrot.slane %v1445_v11, 2  ;;  %v1472_v22 = vrot.slane %v1471_v12, 2  ;;  %v1255_v26 = vadd.f32 %v1254_v9, %v2427_v30  ;;  %v1328_v28 = vadd.f32 %v1327_v10, %v2432_v53 }
 0x2cb   : > { %v1434_v31 = vmax.f32 %v1432_v23, %v1433_v4  ;;  %v1460_v32 = vmax.f32 %v1458_v5, %v1459_v15  ;;  %v1372_v34 = vmax.f32 %v1253_v16, 0.0  ;;  %v1374_v55 = vmax.f32 %v1326_v18, 0.0 }
 0x2cc   : > { %v1447_v36 = vmax.f32 %v1445_v11, %v1446_v21  ;;  %v1473_v37 = vmax.f32 %v1471_v12, %v1472_v22  ;;  %v1373_v38 = vmax.f32 %v1255_v26, 0.0  ;;  %v1375_v2 = vmax.f32 %v1328_v28, 0.0  ;;  %v1258_v27 = vpop.f32.mrb[20].mxu1  ;;  %v1331_v33 = vpop.f32.mrb[28].mxu0 }
 0x2cd   : > { %v1435_v35 = vrot.slane %v1434_v31, 1  ;;  %v1461_v48 = vrot.slane %v1460_v32, 1  ;;  %v1476_v39 = vmax.f32 %v1364_v7, %v1372_v34  ;;  %v1502_v40 = vmax.f32 %v1366_v8, %v1374_v55  ;;  %v1260_v41 = vpop.f32.mrb[21].mxu1  ;;  %v1333_v52 = vpop.f32.mrb[29].mxu0 }
 0x2ce   : > { %v1448_v56 = vrot.slane %v1447_v36, 1  ;;  %v1474_v42 = vrot.slane %v1473_v37, 1  ;;  %v1489_v51 = vmax.f32 %v1365_v13, %v1373_v38  ;;  %v1515_v0 = vmax.f32 %v1367_v14, %v1375_v2  ;;  %v1262_v43 = vpop.f32.mrb[22].mxu1  ;;  %v1335_v44 = vpop.f32.mrb[30].mxu0 }
 0x2cf   : > { %v1436_v46 = vmax.f32 %v1434_v31, %v1435_v35  ;;  %v1462_v47 = vmax.f32 %v1460_v32, %v1461_v48  ;;  %v1259_v3 = vadd.f32 %v1258_v27, %v2419_v20  ;;  %v1332_v6 = vadd.f32 %v1331_v33, %v2424_v29  ;;  %v1264_v49 = vpop.f32.mrb[23].mxu1  ;;  %v1337_v50 = vpop.f32.mrb[31].mxu0 }
 0x2d0   : > { %v1449_v54 = vmax.f32 %v1447_v36, %v1448_v56  ;;  %v1475_v1 = vmax.f32 %v1473_v37, %v1474_v42  ;;  %v1261_v57 = vadd.f32 %v1260_v41, %v2427_v30  ;;  %v1334_v25 = vadd.f32 %v1333_v52, %v2432_v53 }
 0x2d1   : > { %v1380_v58 = vmax.f32 %v1259_v3, 0.0  ;;  %v1382_v59 = vmax.f32 %v1332_v6, 0.0  ;;  %v1263_v60 = vadd.f32 %v1262_v43, %v2419_v20  ;;  %v1336_v61 = vadd.f32 %v1335_v44, %v2424_v29 }
 0x2d2   : > { %v1542_v62 = vcombine.low %v1436_v46, %v1449_v54  ;;  %v1543_v63 = vcombine.low %v1462_v47, %v1475_v1  ;;  %v1381_v17 = vmax.f32 %v1261_v57, 0.0  ;;  %v1383_v19 = vmax.f32 %v1334_v25, 0.0 }
 0x2d3   : > { %v1477_v45 = vmax.f32 %v1476_v39, %v1380_v58  ;;  %v1503_v23 = vmax.f32 %v1502_v40, %v1382_v59  ;;  %v1388_v5 = vmax.f32 %v1263_v60, 0.0  ;;  %v1390_v7 = vmax.f32 %v1336_v61, 0.0 }
 0x2d4   : > { %v2456_v8 = vrot.slane %v1542_v62, %v2439_v24  ;;  %v2459_v9 = vrot.slane %v1543_v63, %v2439_v24  ;;  %v1490_v10 = vmax.f32 %v1489_v51, %v1381_v17  ;;  %v1516_v11 = vmax.f32 %v1515_v0, %v1383_v19  ;;  %v1268_v12 = vpop.f32.mrb[24].mxu1  ;;  %v1341_v13 = vpop.f32.mrb[32].mxu0 }
 0x2d5   : > { %v1478_v14 = vmax.f32 %v1477_v45, %v1388_v5  ;;  %v1504_v4 = vmax.f32 %v1503_v23, %v1390_v7  ;;  %v1265_v15 = vadd.f32 %v1264_v49, %v2427_v30  ;;  %v1338_v16 = vadd.f32 %v1337_v50, %v2432_v53  ;;  %v1270_v18 = vpop.f32.mrb[25].mxu1  ;;  %v1343_v21 = vpop.f32.mrb[33].mxu0 }
 0x2d6   : > { %v1574_v22 = vcombine.low %v2456_v8, %v2459_v9  ;;  %v1269_v26 = vadd.f32 %v1268_v12, %v2419_v20  ;;  %v1342_v28 = vadd.f32 %v1341_v13, %v2424_v29  ;;  %v1271_v31 = vadd.f32 %v1270_v18, %v2427_v30  ;;  %v1272_v32 = vpop.f32.mrb[26].mxu1  ;;  %v1345_v34 = vpop.f32.mrb[34].mxu0 }
 0x2d7   : > { %v1389_v55 = vmax.f32 %v1265_v15, 0.0  ;;  %v1391_v36 = vmax.f32 %v1338_v16, 0.0  ;;  %v1344_v37 = vadd.f32 %v1343_v21, %v2432_v53  ;;  %v1273_v38 = vadd.f32 %v1272_v32, %v2419_v20  ;;  %v1274_v2 = vpop.f32.mrb[27].mxu1  ;;  %v1347_v27 = vpop.f32.mrb[35].mxu0 }
 0x2d8   : > { %v1396_v33 = vmax.f32 %v1269_v26, 0.0  ;;  %v1398_v35 = vmax.f32 %v1342_v28, 0.0  ;;  %v1397_v48 = vmax.f32 %v1271_v31, 0.0  ;;  %v1346_v39 = vadd.f32 %v1345_v34, %v2424_v29 }
 0x2d9   : > { %v1491_v40 = vmax.f32 %v1490_v10, %v1389_v55  ;;  %v1517_v41 = vmax.f32 %v1516_v11, %v1391_v36  ;;  %v1399_v52 = vmax.f32 %v1344_v37, 0.0  ;;  %v1404_v56 = vmax.f32 %v1273_v38, 0.0 }
 0x2da   : > { %v1479_v42 = vmax.f32 %v1478_v14, %v1396_v33  ;;  %v1505_v51 = vmax.f32 %v1504_v4, %v1398_v35  ;;  %v1406_v0 = vmax.f32 %v1346_v39, 0.0  ;;  %v1275_v43 = vadd.f32 %v1274_v2, %v2427_v30 }
 0x2db   : > { %v1492_v44 = vmax.f32 %v1491_v40, %v1397_v48  ;;  %v1518_v46 = vmax.f32 %v1517_v41, %v1399_v52  ;;  %v1348_v47 = vadd.f32 %v1347_v27, %v2432_v53 }
 0x2dc   : > { %v1480_v3 = vmax.f32 %v1479_v42, %v1404_v56  ;;  %v1506_v6 = vmax.f32 %v1505_v51, %v1406_v0  ;;  %v1405_v49 = vmax.f32 %v1275_v43, 0.0  ;;  %v1278_v50 = vpop.f32.mrb[28].mxu1 }
 0x2dd   : > { %v1407_v54 = vmax.f32 %v1348_v47, 0.0  ;;  %v1279_v1 = vadd.f32 %v1278_v50, %v2419_v20  ;;  %v1280_v57 = vpop.f32.mrb[29].mxu1 }
 0x2de   : > { %v1493_v25 = vmax.f32 %v1492_v44, %v1405_v49  ;;  %v1281_v58 = vadd.f32 %v1280_v57, %v2427_v30  ;;  %v1282_v59 = vpop.f32.mrb[30].mxu1 }
 0x2df   : > { %v1519_v60 = vmax.f32 %v1518_v46, %v1407_v54  ;;  %v1412_v61 = vmax.f32 %v1279_v1, 0.0  ;;  %v1283_v62 = vadd.f32 %v1282_v59, %v2419_v20  ;;  %v1284_v63 = vpop.f32.mrb[31].mxu1 }
 0x2e0   : > { %v1413_v17 = vmax.f32 %v1281_v58, 0.0  ;;  %v1285_v19 = vadd.f32 %v1284_v63, %v2427_v30 }
 0x2e1   : > { %v1481_v45 = vmax.f32 %v1480_v3, %v1412_v61  ;;  %v1420_v23 = vmax.f32 %v1283_v62, 0.0 }
 0x2e2   : > { %v1494_v5 = vmax.f32 %v1493_v25, %v1413_v17  ;;  %v1421_v7 = vmax.f32 %v1285_v19, 0.0  ;;  %v1582_v25 = vrot.slane %v1574_v22, %v2439_v24 }
 0x2e3   : > { %v1482_v10 = vmax.f32 %v1481_v45, %v1420_v23 }
 0x2e4   : > { %v1495_v11 = vmax.f32 %v1494_v5, %v1421_v7  ;;  %v1351_v12 = vpop.f32.mrb[32].mxu1 }
 0x2e5   : > { %v1483_v13 = vrot.slane %v1482_v10, 4  ;;  %v1352_v14 = vadd.f32 %v1351_v12, %v2424_v29  ;;  %v1353_v4 = vpop.f32.mrb[33].mxu1 }
 0x2e6   : > { %v1496_v15 = vrot.slane %v1495_v11, 4  ;;  %v1354_v16 = vadd.f32 %v1353_v4, %v2432_v53  ;;  %v1355_v18 = vpop.f32.mrb[34].mxu1 }
 0x2e7   : > { %v1484_v20 = vmax.f32 %v1482_v10, %v1483_v13  ;;  %v1414_v21 = vmax.f32 %v1352_v14, 0.0  ;;  %v1356_v26 = vadd.f32 %v1355_v18, %v2424_v29  ;;  %v1357_v30 = vpop.f32.mrb[35].mxu1 }
 0x2e8   : > { %v1497_v28 = vmax.f32 %v1495_v11, %v1496_v15  ;;  %v1415_v31 = vmax.f32 %v1354_v16, 0.0  ;;  %v1358_v32 = vadd.f32 %v1357_v30, %v2432_v53 }
 0x2e9   : > { %v1485_v34 = vrot.slane %v1484_v20, 2  ;;  %v1507_v55 = vmax.f32 %v1506_v6, %v1414_v21  ;;  %v1422_v36 = vmax.f32 %v1356_v26, 0.0 }
 0x2ea   : > { %v1498_v37 = vrot.slane %v1497_v28, 2  ;;  %v1520_v38 = vmax.f32 %v1519_v60, %v1415_v31  ;;  %v1423_v2 = vmax.f32 %v1358_v32, 0.0 }
 0x2eb   : > { %v1486_v27 = vmax.f32 %v1484_v20, %v1485_v34  ;;  %v1508_v33 = vmax.f32 %v1507_v55, %v1422_v36 }
 0x2ec   : > { %v1499_v35 = vmax.f32 %v1497_v28, %v1498_v37  ;;  %v1521_v48 = vmax.f32 %v1520_v38, %v1423_v2 }
 0x2ed   : > { %v1487_v39 = vrot.slane %v1486_v27, 1  ;;  %v1509_v40 = vrot.slane %v1508_v33, 4 }
 0x2ee   : > { %v1500_v41 = vrot.slane %v1499_v35, 1  ;;  %v1522_v29 = vrot.slane %v1521_v48, 4 }
 0x2ef   : > { %v1488_v52 = vmax.f32 %v1486_v27, %v1487_v39  ;;  %v1510_v56 = vmax.f32 %v1508_v33, %v1509_v40 }
 0x2f0   : > { %v1501_v42 = vmax.f32 %v1499_v35, %v1500_v41  ;;  %v1523_v51 = vmax.f32 %v1521_v48, %v1522_v29 }
 0x2f1   : > { %v1511_v53 = vrot.slane %v1510_v56, 2 }
 0x2f2   : > { %v1544_v0 = vcombine.low %v1488_v52, %v1501_v42  ;;  %v1524_v43 = vrot.slane %v1523_v51, 2 }
 0x2f3   : > { %v1512_v44 = vmax.f32 %v1510_v56, %v1511_v53 }
 0x2f4   : > { %v1525_v46 = vmax.f32 %v1523_v51, %v1524_v43  ;;  %v1566_v54 = vrot.slane %v1544_v0, %v2439_v24 }
 0x2f5   : > { %v1513_v47 = vrot.slane %v1512_v44, 1 }
 0x2f6   : > { %v1526_v3 = vrot.slane %v1525_v46, 1 }
 0x2f7   : > { %v1514_v6 = vmax.f32 %v1512_v44, %v1513_v47 }
 0x2f8   : > { %v1527_v49 = vmax.f32 %v1525_v46, %v1526_v3 }
 0x2fa   : > { %v1545_v50 = vcombine.low %v1514_v6, %v1527_v49 }
 0x2fc   : > { %v1573_v1 = vrot.slane %v1545_v50, %v2439_v24 }
 0x2fe   : > { %v1575_v57 = vcombine.low %v1566_v54, %v1573_v1 }
 0x300   : > { %v1589_v58 = vrot.slane %v1575_v57, %v2439_v24 }
 0x302   : > { %v1590_v59 = vcombine.low %v1582_v25, %v1589_v58 }
 0x304   : > { %1593 = vst [vmem:[%s309_s21] sm:$0xff] %v1590_v59 }
 0x305   : > { %1957 = shalt.err (!%p1954_p6)
}
 0x306   : > { %s1958_s10 = scalar_lea.hbm %s2493_s15, 128  ;;  %s1962_s20 = scalar_lea.hbm %s2547_s7, 256 }
 0x307   : > { %p1959_p7 = scmp.ne.s32.totalorder %s2493_s15, %s1958_s10  ;;  %p1963_p0 = scmp.lt.u32.totalorder %s2493_s15, %s2547_s7 }
 0x308   : > { %p1964_p2 = scmp.lt.u32.totalorder %s1962_s20, %s1958_s10  ;;  %p1966_p8 = scmp.lt.u32.totalorder %s1958_s10, %s2493_s15 }
 0x309   : > { %p1960_p9 = pnand %p1959_p7, %p2559_p10 }
 0x30a   : > { %p1965_p4 = por %p1964_p2, %p1963_p0 }
 0x30b   : > { %p1961_p12 = pneg %p1960_p9 }
 0x30c   : > { %p1967_p11 = por %p1966_p8, %p1965_p4 }
 0x30e   : > { %p1968_p13 = pnand %p1967_p11, %p1961_p12 }
 0x310   : > { %1971 = shalt.err (!%p1968_p13)
}
 0x311   : > { %1829 = dma.vmem_to_hbm [thread:$0]  (%p2559_p10), %s2495_s23, 128, %s2493_s15, %s1595_s22  }
 0x312 PF: > { %p1841_p1 = scmp.ge.s32.totalorder %s2026_s29, 2  ;;  %s1621_s18 = sand.u32 1, %s2006_s24  }
 0x313   : > { %p2560_p3 = scmp.ne.s32.totalorder %s2553_s13, 0  ;;  %s1622_s30 = scalar_lea.sflag [#allocation4], %s1621_s18 }
 0x315   : > { %p1836_p5 = pnand %p1841_p1, %p2560_p3 }
 0x317   : > { %2001 = dma.done.wait (!%p1836_p5), %s1622_s30, 128  }
 0x318   : > { %2003 = vsyncadd (!%p1836_p5), %s1622_s30, 4294967168  ;;  %s21_s29 = sadd.s32 1, %s2026_s29   ;;  %s2561_s24 = smov %s2010_s25 }
 0x319   : > { %p18_p6 = scmp.ge.s32.totalorder %s21_s29, 4   ;;  %s2562_s25 = smov %s2014_s26 }
 0x31a   : > { %s2563_s26 = smov %s2129_s14  ;;  %s2564_s27 = smov %s2022_s28 }
 0x31b   : > { %s2565_s28 = smov %s2567_s9  ;;  %20 = sbr.rel (!%p18_p6) target bundleno = 5 (0x5), region = 92 }
 0x322   :  { %1627 = vsyncpa [#allocation3], 1 }
 0x323   :  { %1629 = vsyncpa [#allocation3 + $0x1], 1 }
 0x324   :  { %1630 = vsyncpa [#allocation4], 1 }
 0x325   :  { %1632 = vsyncpa [#allocation4 + $0x1], 1 }

</bundles_post_ra>
